<compile_context>
chip_gen: v6e
topology: v6e:2x2x1
jax: 0.10.0
libtpu: 0.0.40
codegen_flags: <defaults>
</compile_context>

<pallas_src>
import functools
import math

import jax
import jax.numpy as jnp
from jax import lax
from jax.experimental import pallas as pl
from jax.experimental.pallas import tpu as pltpu


def _make_p_fn(alpha):
    """Build p(z) = clamp(z, 0) ** (1/(alpha-1)) with the cheapest lowering.

    Integer / half-integer exponents become multiply(/sqrt) chains (VALU / single EUP
    op); only truly generic exponents pay the log+exp path on the single EUP slot.
    """
    inv = 1.0 / (alpha - 1.0)

    def _ipow(t, n):
        # n >= 1, exponentiation by squaring (pure VALU multiply chain).
        acc = None
        base = t
        while n:
            if n & 1:
                acc = base if acc is None else acc * base
            n >>= 1
            if n:
                base = base * base
        return acc

    n = int(round(inv))
    if abs(inv - n) < 1e-9 and 1 <= n <= 8:
        if n == 1:                                   # alpha == 2 (sparsemax)
            return lambda z: jnp.maximum(z, 0.0)
        return lambda z: _ipow(jnp.maximum(z, 0.0), n)   # e.g. 1.5 -> t*t, 4/3 -> t*t*t

    h = int(round(inv * 2.0))
    if abs(inv * 2.0 - h) < 1e-9 and h % 2 == 1 and 1 <= h <= 17:
        k = h // 2                                   # inv = k + 0.5
        if k == 0:                                   # alpha == 3 -> sqrt(t), 1 EUP op
            return lambda z: jnp.sqrt(jnp.maximum(z, 0.0))

        def _p_half(z, k=k):
            t = jnp.maximum(z, 0.0)
            return _ipow(t, k) * jnp.sqrt(t)

        return _p_half

    return lambda z: jnp.maximum(z, 0.0) ** inv      # generic alpha (log+exp on EUP)


def _entmax_bisect_kernel(x_ref, o_ref, *, alpha, n_iter, d, mode):
    x = x_ref[...].astype(jnp.float32)
    am1 = alpha - 1.0
    p_fn = _make_p_fn(alpha)

    if mode == "small":
        # One in-kernel transpose per tile (XLU), amortized over the whole bisection
        # loop, puts ROWS on the 128-lane axis so every vreg is fully dense for D<128.
        x = x.T                                      # (D, tm)
        axis = 0
    else:
        axis = -1

    xs = x * am1
    max_val = jnp.max(x, axis=axis, keepdims=True) * am1

    tau_lo = max_val - 1.0                           # _gp(1, alpha) == 1
    tau_hi = max_val - (1.0 / d) ** am1              # _gp(1/d, alpha)
    dm = tau_hi - tau_lo

    if mode == "mxu":
        # Row-sum on the (otherwise idle) MXU: p @ ones gives the row sum replicated
        # across every lane, so the per-iteration reduce leaves the XLU entirely and
        # tau needs no per-iteration lane-broadcast.
        ones = jnp.ones((d, d), jnp.float32)

        def rowsum(p):
            return jnp.dot(p, ones, preferred_element_type=jnp.float32)

        # Hoisted once; carried lane-replicated through the loop.
        tau_lo = jnp.broadcast_to(tau_lo, xs.shape)
        dm = jnp.broadcast_to(dm, xs.shape)
    else:

        def rowsum(p):
            return jnp.sum(p, axis=axis, keepdims=True)

    # f_lo = sum(_p(xs - tau_lo)) - 1 >= 0 by construction (the max element contributes
    # exactly 1 at tau_lo), so the reference sign test (f_m * f_lo >= 0) is just f_m >= 0.
    def body(_, carry):
        tau_lo, dm = carry
        dm = dm * 0.5
        tau_m = tau_lo + dm
        p_m = p_fn(xs - tau_m)
        mask = rowsum(p_m) >= 1.0
        tau_lo = jnp.where(mask, tau_m, tau_lo)
        return tau_lo, dm

    tau_lo, dm = lax.fori_loop(0, n_iter - 1, body, (tau_lo, dm))

    # Peeled final iteration: the reference returns p at the last midpoint; reuse both
    # p_m and its row-sum here instead of recomputing after the loop.
    dm = dm * 0.5
    p_m = p_fn(xs - (tau_lo + dm))
    s = rowsum(p_m)
    p = p_m * pl.reciprocal(s, approx=False)         # ensure_sum_one; once, off hot loop

    if mode == "small":
        p = p.T                                      # back to the (tm, D) block layout
    o_ref[...] = p.astype(o_ref.dtype)


def _round_up(a, b):
    return -(-a // b) * b


def _choose_rows_per_tile(rows, d, itemsize, unit, tile_bytes, min_blocks):
    """Rows per block: ~tile_bytes of input per tile, rounded to `unit`.

    min_blocks > 1 (v7x megacore) rounds the block count up to a multiple of the core
    count and splits rows evenly, so the two TensorCores get balanced work.  On single
    TC parts (v5e/v6e) no split is forced: problems that fit one tile run as one block.
    """
    if rows <= unit:
        return rows
    bytes_per_row = max(1, d * itemsize)
    cap = max(unit, (tile_bytes // bytes_per_row) // unit * unit)
    nblocks = _round_up(rows, cap) // cap            # ceil(rows / cap)
    nblocks = max(nblocks, min_blocks)
    if min_blocks > 1:
        nblocks = _round_up(nblocks, min_blocks)
    tm = _round_up(_round_up(rows, nblocks) // nblocks, unit)
    return min(tm, rows)


def _device_kind():
    try:
        return jax.devices()[0].device_kind.lower()
    except Exception:  # pragma: no cover - defensive only
        return ""


def entmax_bisect_pallas(x, alpha=1.5, dim=-1, n_iter=50, tile_bytes=2 << 20):
    # TODO(synk): tensor-valued (per-row) alpha of the PyTorch module is not supported;
    # scalar alpha only.  Backward pass is likewise not implemented (forward only).
    alpha = float(alpha)
    if alpha <= 1.0:
        raise ValueError("entmax_bisect_pallas requires alpha > 1 (alpha=1 is softmax).")

    x = jnp.asarray(x)
    if not jnp.issubdtype(x.dtype, jnp.floating):
        x = x.astype(jnp.float32)
    out_dtype = x.dtype

    dim = dim % x.ndim
    xt = jnp.moveaxis(x, dim, -1)
    lead_shape = xt.shape[:-1]
    D = xt.shape[-1]
    R = math.prod(lead_shape) if lead_shape else 1
    x2 = xt.reshape(R, D)

    # 30 halvings of a bracket of width <= 1 (scaled units) is below f32 tau resolution.
    n_eff = max(1, min(int(n_iter), 30))

    if D < 128 and D % 8 == 0:
        mode = "small"   # in-kernel transpose: rows on lanes -> fully dense vregs
        unit = 128       # make the in-kernel lane axis a multiple of 128 when possible
    elif D < 512:
        mode = "mxu"     # per-iteration row-sum on the MXU (XLU is the binding slot here)
        unit = 8
    else:
        mode = "lane"    # lane reduce already amortized; kernel is VALU-bound
        unit = 8

    kind = _device_kind()
    min_blocks = 2 if "v7" in kind else 1            # v7x: 2 TCs -> even, balanced grid

    tm = _choose_rows_per_tile(R, D, x2.dtype.itemsize, unit, tile_bytes, min_blocks)
    grid = (pl.cdiv(R, tm),)

    kernel = functools.partial(
        _entmax_bisect_kernel, alpha=alpha, n_iter=n_eff, d=D, mode=mode
    )
    out = pl.pallas_call(
        kernel,
        out_shape=jax.ShapeDtypeStruct((R, D), out_dtype),
        grid_spec=pltpu.PrefetchScalarGridSpec(
            num_scalar_prefetch=0,
            grid=grid,
            in_specs=[pl.BlockSpec((tm, D), lambda i: (i, 0))],
            out_specs=pl.BlockSpec((tm, D), lambda i: (i, 0)),
        ),
        compiler_params=pltpu.CompilerParams(
            dimension_semantics=("parallel",),
            # ~2 MiB input tiles: (2 in + 2 out) double buffers + a handful of live f32
            # intermediates stays well under 40 MiB, safe on v5e/v6e (128 MiB) and on
            # v7x (64 MiB physical VMEM).
            vmem_limit_bytes=40 * 1024 * 1024,
        ),
    )(x2)

    out = out.reshape(*lead_shape, D)
    return jnp.moveaxis(out, -1, dim)


class EntmaxBisect:
    """JAX/Pallas counterpart of the PyTorch EntmaxBisect module (forward only)."""

    def __init__(self, alpha=1.5, dim=-1, n_iter=50):
        self.alpha = alpha
        self.dim = dim
        self.n_iter = n_iter

    def __call__(self, x):
        return entmax_bisect_pallas(x, alpha=self.alpha, dim=self.dim, n_iter=self.n_iter)


def _entmax_bisect_ref(x, alpha=1.5, dim=-1, n_iter=50):
    """Pure-JAX reference mirroring the PyTorch forward, for correctness checking."""
    x = jnp.asarray(x, jnp.float32)
    am1 = alpha - 1.0
    d = x.shape[dim]

    def _p(z):
        return jnp.maximum(z, 0.0) ** (1.0 / am1)

    max_val = jnp.max(x, axis=dim, keepdims=True)
    xs = x * am1
    max_val = max_val * am1
    tau_lo = max_val - 1.0
    tau_hi = max_val - (1.0 / d) ** am1
    f_lo = jnp.sum(_p(xs - tau_lo), axis=dim, keepdims=True) - 1.0
    dm = tau_hi - tau_lo
    p_m = jnp.zeros_like(xs)
    for _ in range(n_iter):
        dm = dm / 2.0
        tau_m = tau_lo + dm
        p_m = _p(xs - tau_m)
        f_m = jnp.sum(p_m, axis=dim, keepdims=True) - 1.0
        mask = (f_m * f_lo) >= 0.0
        tau_lo = jnp.where(mask, tau_m, tau_lo)
    return p_m / jnp.sum(p_m, axis=dim, keepdims=True)


def _check(x, alpha, dim):
    module = EntmaxBisect(alpha=alpha, dim=dim, n_iter=50)
    out = jax.block_until_ready(module(x))
    assert out.shape == x.shape
    assert bool(jnp.all(out >= 0.0))
    assert bool(jnp.allclose(jnp.sum(out, axis=dim), 1.0, atol=1e-5))
    ref = _entmax_bisect_ref(x, alpha=alpha, dim=dim, n_iter=50)
    assert bool(jnp.allclose(out, ref, atol=1e-5, rtol=1e-5))


if __name__ == "__main__":
    key = jax.random.PRNGKey(0)
    k1, k2, k3 = jax.random.split(key, 3)

    # Small-D path (D < 128): natural-layout blocks + in-kernel transpose, alpha=1.5.
    x_small = jax.random.normal(k1, (2, 4, 16, 16), dtype=jnp.float32) * 3.0
    _check(x_small, alpha=1.5, dim=-1)

    # Mid-D path (128 <= D < 512): MXU row-sum, sparsemax specialization (alpha=2).
    x_mid = jax.random.normal(k2, (8, 256), dtype=jnp.float32) * 3.0
    _check(x_mid, alpha=2.0, dim=-1)

    # Large-D path (D >= 512): lane reduce, alpha=4/3 lowers to a t*t*t multiply chain.
    x_large = jax.random.normal(k3, (4, 640), dtype=jnp.float32) * 3.0
    _check(x_large, alpha=4.0 / 3.0, dim=-1)

    print("KERNEL_OK")
</pallas_src>

<mosaic_0001>
module attributes {stable_mosaic.version = 11 : i64} {
  func.func @_entmax_bisect_kernel(%arg0: i32, %arg1: memref<128x16xf32, #tpu.memory_space<vmem>>, %arg2: memref<128x16xf32, #tpu.memory_space<vmem>>) attributes {dimension_semantics = [#tpu.dimension_semantics<parallel>], iteration_bounds = array<i64: 1>, scalar_prefetch = 0 : i64, scratch_operands = 0 : i64, tpu.core_type = #tpu.core_type<tc>, window_params = [{transform_indices = @transform_0, window_bounds = array<i64: 128, 16>}, {transform_indices = @transform_1, window_bounds = array<i64: 128, 16>}]} {
    %c0 = arith.constant 0 : index
    %c0_0 = arith.constant 0 : index
    %0 = vector.load %arg1[%c0, %c0_0] : memref<128x16xf32, #tpu.memory_space<vmem>>, vector<128x16xf32>
    %1 = tpu.transpose %0, [1, 0] : vector<128x16xf32> -> vector<16x128xf32>
    %cst = arith.constant 5.000000e-01 : f32
    %2 = vector.broadcast %cst : f32 to vector<16x128xf32>
    %3 = arith.mulf %1, %2 : vector<16x128xf32>
    %cst_1 = arith.constant dense<0xFF800000> : vector<128xf32>
    %4 = vector.multi_reduction <maximumf>, %1, %cst_1 [0] : vector<16x128xf32> to vector<128xf32>
    %5 = vector.shape_cast %4 : vector<128xf32> to vector<1x128xf32>
    %cst_2 = arith.constant 5.000000e-01 : f32
    %6 = vector.broadcast %cst_2 : f32 to vector<1x128xf32>
    %7 = arith.mulf %5, %6 : vector<1x128xf32>
    %cst_3 = arith.constant 1.000000e+00 : f32
    %8 = vector.broadcast %cst_3 : f32 to vector<1x128xf32>
    %9 = arith.subf %7, %8 : vector<1x128xf32>
    %cst_4 = arith.constant 2.500000e-01 : f32
    %10 = vector.broadcast %cst_4 : f32 to vector<1x128xf32>
    %11 = arith.subf %7, %10 : vector<1x128xf32>
    %12 = arith.subf %11, %9 : vector<1x128xf32>
    %c0_i32 = arith.constant 0 : i32
    %c29_i32 = arith.constant 29 : i32
    %13 = arith.addi %c0_i32, %c29_i32 : i32
    %c1_i32 = arith.constant 1 : i32
    %14:2 = scf.for %arg3 = %c0_i32 to %13 step %c1_i32 iter_args(%arg4 = %9, %arg5 = %12) -> (vector<1x128xf32>, vector<1x128xf32>)  : i32 {
      %cst_10 = arith.constant 5.000000e-01 : f32
      %30 = vector.broadcast %cst_10 : f32 to vector<1x128xf32>
      %31 = arith.mulf %arg5, %30 : vector<1x128xf32>
      %32 = arith.addf %arg4, %31 : vector<1x128xf32>
      %33 = vector.broadcast %32 : vector<1x128xf32> to vector<16x128xf32>
      %34 = arith.subf %3, %33 : vector<16x128xf32>
      %cst_11 = arith.constant 0.000000e+00 : f32
      %35 = vector.broadcast %cst_11 : f32 to vector<16x128xf32>
      %36 = arith.maximumf %34, %35 : vector<16x128xf32>
      %37 = arith.mulf %36, %36 : vector<16x128xf32>
      %cst_12 = arith.constant dense<0.000000e+00> : vector<128xf32>
      %38 = vector.multi_reduction <add>, %37, %cst_12 [0] : vector<16x128xf32> to vector<128xf32>
      %39 = vector.shape_cast %38 : vector<128xf32> to vector<1x128xf32>
      %cst_13 = arith.constant 1.000000e+00 : f32
      %40 = vector.broadcast %cst_13 : f32 to vector<1x128xf32>
      %41 = arith.cmpf oge, %39, %40 : vector<1x128xf32>
      %42 = arith.select %41, %32, %arg4 : vector<1x128xi1>, vector<1x128xf32>
      scf.yield %42, %31 : vector<1x128xf32>, vector<1x128xf32>
    }
    %cst_5 = arith.constant 5.000000e-01 : f32
    %15 = vector.broadcast %cst_5 : f32 to vector<1x128xf32>
    %16 = arith.mulf %14#1, %15 : vector<1x128xf32>
    %17 = arith.addf %14#0, %16 : vector<1x128xf32>
    %18 = vector.broadcast %17 : vector<1x128xf32> to vector<16x128xf32>
    %19 = arith.subf %3, %18 : vector<16x128xf32>
    %cst_6 = arith.constant 0.000000e+00 : f32
    %20 = vector.broadcast %cst_6 : f32 to vector<16x128xf32>
    %21 = arith.maximumf %19, %20 : vector<16x128xf32>
    %22 = arith.mulf %21, %21 : vector<16x128xf32>
    %cst_7 = arith.constant dense<0.000000e+00> : vector<128xf32>
    %23 = vector.multi_reduction <add>, %22, %cst_7 [0] : vector<16x128xf32> to vector<128xf32>
    %24 = vector.shape_cast %23 : vector<128xf32> to vector<1x128xf32>
    %25 = tpu.reciprocal %24 : vector<1x128xf32> -> vector<1x128xf32>
    %26 = vector.broadcast %25 : vector<1x128xf32> to vector<16x128xf32>
    %27 = arith.mulf %22, %26 : vector<16x128xf32>
    %28 = tpu.transpose %27, [1, 0] : vector<16x128xf32> -> vector<128x16xf32>
    %c0_8 = arith.constant 0 : index
    %c0_9 = arith.constant 0 : index
    %29 = vector.load %arg2[%c0_8, %c0_9] : memref<128x16xf32, #tpu.memory_space<vmem>>, vector<128x16xf32>
    tpu.vector_store %arg2[%c0_8, %c0_9], %28 {strides = array<i32>} : memref<128x16xf32, #tpu.memory_space<vmem>>, vector<128x16xf32>,
    return
  }
  func.func @transform_0(%arg0: i32) -> (i32, i32) {
    %c0_i32 = arith.constant 0 : i32
    %c0_i32_0 = arith.constant 0 : i32
    return %arg0, %c0_i32 : i32, i32
  }
  func.func @transform_1(%arg0: i32) -> (i32, i32) {
    %c0_i32 = arith.constant 0 : i32
    %c0_i32_0 = arith.constant 0 : i32
    return %arg0, %c0_i32 : i32, i32
  }
}

</mosaic_0001>

<bundles_post_ra>
// kernel: tpu_custom_call.1
= control target key start
LH: loop header
LB: loop body
LE: loop exit
PB: predicated region body
PF: predicated region fallthrough
CT: control target
= control target key end

     0   :  { %s225_s9 = smov 0   ;;  %s351_s0 = inlined_call_operand.vmem [shape: f32[128,16], index: 0, kind: input, shape index: {}]   ;;  %s352_s1 = inlined_call_operand.vmem [shape: f32[128,16], index: 1, kind: output, shape index: {}]  }
   0x1   :  { %v8_v0 = vld [vmem:[%s351_s0] sm:$0xff]  ;;  %v9_v1 = vld [vmem:[%s351_s0 + $0x8] sm:$0xff]  ;;  %v10_v2 = vld [vmem:[%s351_s0 + $0x10] sm:$0xff] }
   0x2   :  { %24 = vxpose.xlu0.b32.start [1/16] (narrow) %v8_v0, 16  ;;  %v11_v3 = vld [vmem:[%s351_s0 + $0x18] sm:$0xff]  ;;  %v12_v4 = vld [vmem:[%s351_s0 + $0x20] sm:$0xff]  ;;  %v13_v5 = vld [vmem:[%s351_s0 + $0x28] sm:$0xff] }
   0x3   :  { %v14_v6 = vld [vmem:[%s351_s0 + $0x30] sm:$0xff]  ;;  %v15_v7 = vld [vmem:[%s351_s0 + $0x38] sm:$0xff]  ;;  %v16_v8 = vld [vmem:[%s351_s0 + $0x40] sm:$0xff] }
   0x4   :  { %v17_v9 = vld [vmem:[%s351_s0 + $0x48] sm:$0xff]  ;;  %v18_v10 = vld [vmem:[%s351_s0 + $0x50] sm:$0xff]  ;;  %v19_v11 = vld [vmem:[%s351_s0 + $0x58] sm:$0xff] }
   0x5   :  { %v20_v12 = vld [vmem:[%s351_s0 + $0x60] sm:$0xff]  ;;  %v21_v13 = vld [vmem:[%s351_s0 + $0x68] sm:$0xff]  ;;  %v22_v14 = vld [vmem:[%s351_s0 + $0x70] sm:$0xff] }
   0x6   :  { %25 = vxpose.xlu0.b32.cont [2/16] (narrow) %v9_v1, 16  ;;  %v23_v15 = vld [vmem:[%s351_s0 + $0x78] sm:$0xff] }
   0xa   :  { %26 = vxpose.xlu0.b32.cont [3/16] (narrow) %v10_v2, 16 }
   0xe   :  { %27 = vxpose.xlu0.b32.cont [4/16] (narrow) %v11_v3, 16 }
  0x12   :  { %28 = vxpose.xlu0.b32.cont [5/16] (narrow) %v12_v4, 16 }
  0x16   :  { %29 = vxpose.xlu0.b32.cont [6/16] (narrow) %v13_v5, 16 }
  0x1a   :  { %30 = vxpose.xlu0.b32.cont [7/16] (narrow) %v14_v6, 16 }
  0x1e   :  { %31 = vxpose.xlu0.b32.cont [8/16] (narrow) %v15_v7, 16 }
  0x22   :  { %32 = vxpose.xlu0.b32.cont [9/16] (narrow) %v16_v8, 16 }
  0x26   :  { %33 = vxpose.xlu0.b32.cont [10/16] (narrow) %v17_v9, 16 }
  0x2a   :  { %34 = vxpose.xlu0.b32.cont [11/16] (narrow) %v18_v10, 16 }
  0x2e   :  { %35 = vxpose.xlu0.b32.cont [12/16] (narrow) %v19_v11, 16 }
  0x32   :  { %36 = vxpose.xlu0.b32.cont [13/16] (narrow) %v20_v12, 16 }
  0x36   :  { %37 = vxpose.xlu0.b32.cont [14/16] (narrow) %v21_v13, 16 }
  0x3a   :  { %38 = vxpose.xlu0.b32.cont [15/16] (narrow) %v22_v14, 16 }
  0x3e   :  { %39 = vxpose.xlu0.b32.end [16/16] (narrow) %v23_v15, 16 }
  0x7e   :  { %v40_v16 = vpop.trf.xlu0 }
  0x7f   :  { %v56_v17 = vmul.f32 0.5, %v40_v16 }
  0x82   :  { %v41_v18 = vpop.trf.xlu0 }
  0x83   :  { %v57_v19 = vmul.f32 0.5, %v41_v18  ;;  %v58_v20 = vmax.f32 %v40_v16, %v41_v18 }
  0x85   :  { %v59_v21 = vrot.slane %v58_v20, 4 }
  0x87   :  { %v60_v22 = vmax.f32 %v58_v20, %v59_v21 }
  0x89   :  { %v61_v23 = vrot.slane %v60_v22, 2 }
  0x8b   :  { %v62_v24 = vmax.f32 %v60_v22, %v61_v23 }
  0x8d   :  { %v63_v25 = vrot.slane %v62_v24, 1 }
  0x8f   :  { %v64_v26 = vmax.f32 %v62_v24, %v63_v25 }
  0x91   :  { %v65_v27 = vmul.f32 0.5, %v64_v26 }
  0x93   :  { %v176_v28 = vadd.f32 -1.0, %v65_v27   ;;  %v177_v29 = vadd.f32 -0.25, %v65_v27 }
  0x95   :  { %v68_v30 = vsub.f32 %v177_v29, %v176_v28   ;;  %v221_v32 = vmov %v176_v28  }
  0x97   :  { %v217_v31 = vmov %v68_v30  }
  0x98 LB: > { %v77_v33 = vmul.f32 0.5, %v219_v31   ;;  %s74_s9 = sadd.s32 1, %s227_s9   ;;  %s227_s9 = sphi %s225_s9, %s74_s9   ;;  %v223_v32 = vphi %v221_v32, %v222_v32   ;;  %v219_v31 = vphi %v217_v31, %v218_v31  }
  0x99   : > { %p71_p0 = scmp.ge.s32.totalorder %s74_s9, 29  }
  0x9a   : > { %v78_v34 = vadd.f32 %v223_v32, %v77_v33  ;;  %v218_v31 = vmov %v77_v33   ;;  %v94_v49 = vmul.f32 (%p71_p0), 0.5, %v77_v33  ;;  %vm144_vm1 = vcmask (%p71_p0), 130048  }
  0x9c   : > { %v79_v35 = vsub.f32 %v56_v17, %v78_v34  ;;  %v80_v36 = vsub.f32 %v57_v19, %v78_v34 }
  0x9e   : > { %v81_v37 = vmax.f32 %v79_v35, 0.0  ;;  %v82_v38 = vmax.f32 %v80_v36, 0.0 }
  0xa0   : > { %v83_v39 = vmul.f32 %v81_v37, %v81_v37  ;;  %v84_v40 = vmul.f32 %v82_v38, %v82_v38 }
  0xa2   : > { %v85_v41 = vadd.f32 %v84_v40, %v83_v39 }
  0xa4   : > { %v86_v42 = vrot.slane %v85_v41, 4 }
  0xa6   : > { %v87_v43 = vadd.f32 %v86_v42, %v85_v41 }
  0xa8   : > { %v88_v44 = vrot.slane %v87_v43, 2 }
  0xaa   : > { %v89_v45 = vadd.f32 %v88_v44, %v87_v43 }
  0xac   : > { %v90_v46 = vrot.slane %v89_v45, 1 }
  0xae   : > { %v91_v47 = vadd.f32 %v90_v46, %v89_v45  ;;  %73 = sbr.rel (!%p71_p0) target bundleno = 152 (0x98), region = 31 }
  0xb0   : > { %vm92_vm0 = vcmp.ge.f32.partialorder %v91_v47, 1.0 }
  0xb1   : > { %v93_v48 = vsel %vm92_vm0, %v78_v34, %v223_v32  }
  0xb2   : > { %v222_v32 = vmov %v93_v48   ;;  %v95_v50 = vadd.f32 (%p71_p0), %v94_v49, %v93_v48 }
  0xb4   :  { %v96_v51 = vsub.f32 %v56_v17, %v95_v50  ;;  %v97_v52 = vsub.f32 %v57_v19, %v95_v50 }
  0xb6   :  { %v98_v53 = vmax.f32 %v96_v51, 0.0  ;;  %v99_v54 = vmax.f32 %v97_v52, 0.0 }
  0xb8   :  { %v100_v55 = vmul.f32 %v98_v53, %v98_v53  ;;  %v101_v56 = vmul.f32 %v99_v54, %v99_v54 }
  0xba   :  { %v102_v57 = vadd.f32 %v101_v56, %v100_v55 }
  0xbc   :  { %v103_v58 = vrot.slane %v102_v57, 4 }
  0xbe   :  { %v104_v59 = vadd.f32 %v103_v58, %v102_v57 }
  0xc0   :  { %v105_v60 = vrot.slane %v104_v59, 2 }
  0xc2   :  { %v106_v61 = vadd.f32 %v105_v60, %v104_v59 }
  0xc4   :  { %v107_v62 = vrot.slane %v106_v61, 1 }
  0xc6   :  { %v108_v63 = vadd.f32 %v107_v62, %v106_v61 }
  0xc8   :  { %203 = vrcp.f32 %v108_v63 }
  0xd5   :  { %v204_v0 = vpop.eup %203 }
  0xd6   :  { %v110_v1 = vmul.f32 %v204_v0, %v100_v55  ;;  %v111_v2 = vmul.f32 %v204_v0, %v101_v56 }
  0xd8   :  { %112 = vxpose.xlu0.b32.start [1/2] (short) %v110_v1, 128 }
  0xdc   :  { %113 = vxpose.xlu0.b32.end [2/2] (short) %v111_v2, 128 }
 0x154   :  { %v128_v3 = vpop.trf.xlu0 }
 0x155   :  { %145 = vst.msk [vmem:[%s352_s1] sm:$0xff] %vm144_vm1, %v128_v3 }
 0x158   :  { %v129_v4 = vpop.trf.xlu0 }
 0x159   :  { %146 = vst.msk [vmem:[%s352_s1 + $0x8] sm:$0xff] %vm144_vm1, %v129_v4 }
 0x15c   :  { %v130_v5 = vpop.trf.xlu0 }
 0x15d   :  { %147 = vst.msk [vmem:[%s352_s1 + $0x10] sm:$0xff] %vm144_vm1, %v130_v5 }
 0x160   :  { %v131_v6 = vpop.trf.xlu0 }
 0x161   :  { %148 = vst.msk [vmem:[%s352_s1 + $0x18] sm:$0xff] %vm144_vm1, %v131_v6 }
 0x164   :  { %v132_v7 = vpop.trf.xlu0 }
 0x165   :  { %149 = vst.msk [vmem:[%s352_s1 + $0x20] sm:$0xff] %vm144_vm1, %v132_v7 }
 0x168   :  { %v133_v8 = vpop.trf.xlu0 }
 0x169   :  { %150 = vst.msk [vmem:[%s352_s1 + $0x28] sm:$0xff] %vm144_vm1, %v133_v8 }
 0x16c   :  { %v134_v9 = vpop.trf.xlu0 }
 0x16d   :  { %151 = vst.msk [vmem:[%s352_s1 + $0x30] sm:$0xff] %vm144_vm1, %v134_v9 }
 0x170   :  { %v135_v10 = vpop.trf.xlu0 }
 0x171   :  { %152 = vst.msk [vmem:[%s352_s1 + $0x38] sm:$0xff] %vm144_vm1, %v135_v10 }
 0x174   :  { %v136_v11 = vpop.trf.xlu0 }
 0x175   :  { %153 = vst.msk [vmem:[%s352_s1 + $0x40] sm:$0xff] %vm144_vm1, %v136_v11 }
 0x178   :  { %v137_v12 = vpop.trf.xlu0 }
 0x179   :  { %154 = vst.msk [vmem:[%s352_s1 + $0x48] sm:$0xff] %vm144_vm1, %v137_v12 }
 0x17c   :  { %v138_v13 = vpop.trf.xlu0 }
 0x17d   :  { %155 = vst.msk [vmem:[%s352_s1 + $0x50] sm:$0xff] %vm144_vm1, %v138_v13 }
 0x180   :  { %v139_v14 = vpop.trf.xlu0 }
 0x181   :  { %156 = vst.msk [vmem:[%s352_s1 + $0x58] sm:$0xff] %vm144_vm1, %v139_v14 }
 0x184   :  { %v140_v15 = vpop.trf.xlu0 }
 0x185   :  { %157 = vst.msk [vmem:[%s352_s1 + $0x60] sm:$0xff] %vm144_vm1, %v140_v15 }
 0x188   :  { %v141_v16 = vpop.trf.xlu0 }
 0x189   :  { %158 = vst.msk [vmem:[%s352_s1 + $0x68] sm:$0xff] %vm144_vm1, %v141_v16 }
 0x18c   :  { %v142_v17 = vpop.trf.xlu0 }
 0x18d   :  { %159 = vst.msk [vmem:[%s352_s1 + $0x70] sm:$0xff] %vm144_vm1, %v142_v17 }
 0x190   :  { %v143_v18 = vpop.trf.xlu0 }
 0x191   :  { %160 = vst.msk [vmem:[%s352_s1 + $0x78] sm:$0xff] %vm144_vm1, %v143_v18 }

</bundles_post_ra>
